<compile_context>
chip_gen: v7x
topology: tpu7x:2x2x1
jax: 0.10.0
libtpu: 0.0.40
codegen_flags: <defaults>
</compile_context>

<pallas_src>
import jax
import jax.numpy as jnp
from jax import lax
from jax.experimental import pallas as pl
from jax.experimental.pallas import tpu as pltpu

HIDDEN_PAD = 128   # layer_size=100 zero-padded to the 128-lane vreg width
OUT_ROWS = 8       # final output dim (1) zero-padded to 8 sublanes (row 0 live)


def _round_up(v, m):
    return ((v + m - 1) // m) * m


def _mlp_kernel(x_ref, w1_ref, b1_ref, w2_ref, b2_ref, w3t_ref, b3_ref, o_ref):
    x = x_ref[...]                                                   # (TB, 768) bf16

    # c_fc1 + c_relu1 (c_drop1 is identity at inference); f32 accumulate / elementwise.
    h1 = jnp.dot(x, w1_ref[...], preferred_element_type=jnp.float32)
    h1 = jnp.maximum(h1 + b1_ref[...], 0.0)                          # (TB, 128) f32

    # c_fc2 + c_relu2
    h2 = jnp.dot(h1.astype(jnp.bfloat16), w2_ref[...],
                 preferred_element_type=jnp.float32)
    h2 = jnp.maximum(h2 + b2_ref[...], 0.0)                          # (TB, 128) f32

    # c_fc3, computed transposed so the batch axis is lane-dense:
    #   out_t[o, b] = sum_h w3t[o, h] * h2[b, h]   -> (8, TB), row 0 is the logit.
    out_t = lax.dot_general(
        w3t_ref[...], h2.astype(jnp.bfloat16),
        dimension_numbers=(((1,), (1,)), ((), ())),
        preferred_element_type=jnp.float32)                          # (8, TB)
    o_ref[...] = (out_t + b3_ref[...]).astype(o_ref.dtype)


def dann_task_classifier_forward(x, kernel_params, *, block_b=1024):
    """x: (B, bottleneck_dim) float32. Returns (B,) float32 (Flatten(start_dim=0))."""
    w1, b1, w2, b2, w3t, b3 = kernel_params
    B, D = x.shape
    H = w1.shape[1]            # padded hidden width (128)
    O = w3t.shape[0]           # padded output rows (8)

    # Batch tile: multiple of 128 (lane-dense transposed output) and chosen so
    # there are >= 2 grid steps whenever B > 128 (v7x megacore sharding).
    tb = min(block_b, max(128, _round_up((B + 1) // 2, 128)))
    b_pad = _round_up(B, tb)

    x_bf16 = x.astype(jnp.bfloat16)
    if b_pad != B:
        x_bf16 = jnp.pad(x_bf16, ((0, b_pad - B), (0, 0)))

    grid = (b_pad // tb,)

    def resident(arr):  # weights / biases: full array, constant block index -> VMEM-resident
        return pl.BlockSpec(arr.shape, lambda i: (0, 0))

    flops = 2 * b_pad * (D * H + H * H + H * O)
    bytes_accessed = (x_bf16.size * 2
                      + (w1.size + w2.size + w3t.size) * 2
                      + (b1.size + b2.size + b3.size) * 4
                      + O * b_pad * 4)

    out_t = pl.pallas_call(
        _mlp_kernel,
        out_shape=jax.ShapeDtypeStruct((O, b_pad), jnp.float32),
        grid=grid,
        in_specs=[
            pl.BlockSpec((tb, D), lambda i: (i, 0)),   # streamed x tile
            resident(w1), resident(b1),
            resident(w2), resident(b2),
            resident(w3t), resident(b3),
        ],
        out_specs=pl.BlockSpec((O, tb), lambda i: (0, i)),   # lane-dense logits
        compiler_params=pltpu.CompilerParams(
            dimension_semantics=("parallel",),
            vmem_limit_bytes=32 * 1024 * 1024,
        ),
        cost_estimate=pl.CostEstimate(
            flops=flops, transcendentals=0, bytes_accessed=bytes_accessed),
    )(x_bf16, w1, b1, w2, b2, w3t, b3)

    # c_flatten: Flatten(start_dim=0) of the logical (B, 1) output -> (B,)
    return out_t[0, :B]


def init_params(key, bottleneck_dim=768, layer_size=100):
    """PyTorch-Linear-like fan-in-uniform init, kept in f32 (reference copy)."""
    k1, k2, k3, k4, k5, k6 = jax.random.split(key, 6)

    def lin(kw, kb, fan_in, fan_out):
        bound = 1.0 / jnp.sqrt(fan_in)
        w = jax.random.uniform(kw, (fan_in, fan_out), jnp.float32, -bound, bound)
        b = jax.random.uniform(kb, (1, fan_out), jnp.float32, -bound, bound)
        return w, b

    w1, b1 = lin(k1, k2, bottleneck_dim, layer_size)   # (768,100), (1,100)
    w2, b2 = lin(k3, k4, layer_size, layer_size)       # (100,100), (1,100)
    w3, b3 = lin(k5, k6, layer_size, 1)                # (100,1),   (1,1)
    return (w1, b1, w2, b2, w3, b3)


def pack_params(params, layer_size=100):
    """Zero-pad to lane/sublane-aligned shapes and cast: weights bf16, biases f32.
    w3 is stored transposed as (OUT_ROWS, HIDDEN_PAD) so the kernel can emit a
    lane-dense (OUT_ROWS, TB) output block. Zero padding keeps results exact."""
    w1, b1, w2, b2, w3, b3 = params
    hp, orows = HIDDEN_PAD, OUT_ROWS

    w1p = jnp.pad(w1, ((0, 0), (0, hp - layer_size))).astype(jnp.bfloat16)
    b1p = jnp.pad(b1, ((0, 0), (0, hp - layer_size))).astype(jnp.float32)
    w2p = jnp.pad(w2, ((0, hp - layer_size), (0, hp - layer_size))).astype(jnp.bfloat16)
    b2p = jnp.pad(b2, ((0, 0), (0, hp - layer_size))).astype(jnp.float32)
    w3t = jnp.pad(w3.T, ((0, orows - 1), (0, hp - layer_size))).astype(jnp.bfloat16)
    b3p = jnp.pad(b3.T, ((0, orows - 1), (0, 0))).astype(jnp.float32)   # (8, 1)
    return (w1p, b1p, w2p, b2p, w3t, b3p)


def _reference_bf16(x, params):
    """Same bf16-input / f32-accumulate data path as the kernel."""
    w1, b1, w2, b2, w3, b3 = params
    h = jnp.maximum(jnp.dot(x.astype(jnp.bfloat16), w1.astype(jnp.bfloat16),
                            preferred_element_type=jnp.float32) + b1, 0.0)
    h = jnp.maximum(jnp.dot(h.astype(jnp.bfloat16), w2.astype(jnp.bfloat16),
                            preferred_element_type=jnp.float32) + b2, 0.0)
    out = jnp.dot(h.astype(jnp.bfloat16), w3.astype(jnp.bfloat16),
                  preferred_element_type=jnp.float32) + b3
    return out.reshape(-1)


def _reference_f32(x, params):
    """True f32 semantics of the PyTorch module (eval mode)."""
    w1, b1, w2, b2, w3, b3 = params
    h = jnp.maximum(x @ w1 + b1, 0.0)
    h = jnp.maximum(h @ w2 + b2, 0.0)
    return (h @ w3 + b3).reshape(-1)


if __name__ == "__main__":
    key = jax.random.PRNGKey(0)
    kx, kp = jax.random.split(key)

    B, bottleneck_dim, layer_size = 8, 768, 100
    x = jax.random.normal(kx, (B, bottleneck_dim), jnp.float32)

    params_f32 = init_params(kp, bottleneck_dim, layer_size)
    kernel_params = pack_params(params_f32, layer_size)

    out = dann_task_classifier_forward(x, kernel_params)
    out = jax.block_until_ready(out)

    ref_bf16 = _reference_bf16(x, params_f32)
    ref_f32 = _reference_f32(x, params_f32)

    assert out.shape == (B,)
    # Exact-path check (same bf16 / f32-accumulate numerics as the kernel).
    assert jnp.allclose(out, ref_bf16, atol=2e-3, rtol=2e-3)
    # Sanity vs. the true f32 PyTorch semantics (bf16 inputs/weights only).
    assert jnp.allclose(out, ref_f32, atol=5e-2, rtol=5e-2)

    print("KERNEL_OK")
</pallas_src>

<mosaic_0001>
module attributes {stable_mosaic.version = 11 : i64} {
  func.func @_mlp_kernel(%arg0: i32, %arg1: memref<128x768xbf16, #tpu.memory_space<vmem>>, %arg2: memref<768x128xbf16, #tpu.memory_space<vmem>>, %arg3: memref<1x128xf32, #tpu.memory_space<vmem>>, %arg4: memref<128x128xbf16, #tpu.memory_space<vmem>>, %arg5: memref<1x128xf32, #tpu.memory_space<vmem>>, %arg6: memref<8x128xbf16, #tpu.memory_space<vmem>>, %arg7: memref<8x1xf32, #tpu.memory_space<vmem>>, %arg8: memref<8x128xf32, #tpu.memory_space<vmem>>) attributes {dimension_semantics = [#tpu.dimension_semantics<parallel>], iteration_bounds = array<i64: 1>, scalar_prefetch = 0 : i64, scratch_operands = 0 : i64, tpu.core_type = #tpu.core_type<tc>, window_params = [{transform_indices = @transform_0, window_bounds = array<i64: 128, 768>}, {pipeline_mode = #tpu.pipeline_mode<synchronous>, transform_indices = @transform_1, window_bounds = array<i64: 768, 128>}, {pipeline_mode = #tpu.pipeline_mode<synchronous>, transform_indices = @transform_2, window_bounds = array<i64: 1, 128>}, {pipeline_mode = #tpu.pipeline_mode<synchronous>, transform_indices = @transform_3, window_bounds = array<i64: 128, 128>}, {pipeline_mode = #tpu.pipeline_mode<synchronous>, transform_indices = @transform_4, window_bounds = array<i64: 1, 128>}, {pipeline_mode = #tpu.pipeline_mode<synchronous>, transform_indices = @transform_5, window_bounds = array<i64: 8, 128>}, {pipeline_mode = #tpu.pipeline_mode<synchronous>, transform_indices = @transform_6, window_bounds = array<i64: 8, 1>}, {transform_indices = @transform_7, window_bounds = array<i64: 8, 128>}]} {
    %c0 = arith.constant 0 : index
    %c0_0 = arith.constant 0 : index
    %0 = vector.load %arg1[%c0, %c0_0] : memref<128x768xbf16, #tpu.memory_space<vmem>>, vector<128x768xbf16>
    %c0_1 = arith.constant 0 : index
    %c0_2 = arith.constant 0 : index
    %1 = vector.load %arg2[%c0_1, %c0_2] : memref<768x128xbf16, #tpu.memory_space<vmem>>, vector<768x128xbf16>
    %cst = arith.constant dense<0.000000e+00> : vector<128x128xf32>
    %2 = tpu.matmul %0, %1, %cst {dimension_numbers = #tpu.dot_dimension_numbers<[1], [0], [0], [1], [0, 0, 1, 1], [], []>} : vector<128x768xbf16>, vector<768x128xbf16>, vector<128x128xf32> -> vector<128x128xf32>
    %c0_3 = arith.constant 0 : index
    %c0_4 = arith.constant 0 : index
    %3 = vector.load %arg3[%c0_3, %c0_4] : memref<1x128xf32, #tpu.memory_space<vmem>>, vector<1x128xf32>
    %4 = vector.broadcast %3 : vector<1x128xf32> to vector<128x128xf32>
    %5 = arith.addf %2, %4 : vector<128x128xf32>
    %cst_5 = arith.constant 0.000000e+00 : f32
    %6 = vector.broadcast %cst_5 : f32 to vector<128x128xf32>
    %7 = arith.maximumf %5, %6 : vector<128x128xf32>
    %8 = arith.truncf %7 : vector<128x128xf32> to vector<128x128xbf16>
    %c0_6 = arith.constant 0 : index
    %c0_7 = arith.constant 0 : index
    %9 = vector.load %arg4[%c0_6, %c0_7] : memref<128x128xbf16, #tpu.memory_space<vmem>>, vector<128x128xbf16>
    %cst_8 = arith.constant dense<0.000000e+00> : vector<128x128xf32>
    %10 = tpu.matmul %8, %9, %cst_8 {dimension_numbers = #tpu.dot_dimension_numbers<[1], [0], [0], [1], [0, 0, 1, 1], [], []>} : vector<128x128xbf16>, vector<128x128xbf16>, vector<128x128xf32> -> vector<128x128xf32>
    %c0_9 = arith.constant 0 : index
    %c0_10 = arith.constant 0 : index
    %11 = vector.load %arg5[%c0_9, %c0_10] : memref<1x128xf32, #tpu.memory_space<vmem>>, vector<1x128xf32>
    %12 = vector.broadcast %11 : vector<1x128xf32> to vector<128x128xf32>
    %13 = arith.addf %10, %12 : vector<128x128xf32>
    %cst_11 = arith.constant 0.000000e+00 : f32
    %14 = vector.broadcast %cst_11 : f32 to vector<128x128xf32>
    %15 = arith.maximumf %13, %14 : vector<128x128xf32>
    %c0_12 = arith.constant 0 : index
    %c0_13 = arith.constant 0 : index
    %16 = vector.load %arg6[%c0_12, %c0_13] : memref<8x128xbf16, #tpu.memory_space<vmem>>, vector<8x128xbf16>
    %17 = arith.truncf %15 : vector<128x128xf32> to vector<128x128xbf16>
    %cst_14 = arith.constant dense<0.000000e+00> : vector<8x128xf32>
    %18 = tpu.matmul %16, %17, %cst_14 {dimension_numbers = #tpu.dot_dimension_numbers<[1], [1], [0], [0], [0, 0, 1, 0], [], []>} : vector<8x128xbf16>, vector<128x128xbf16>, vector<8x128xf32> -> vector<8x128xf32>
    %c0_15 = arith.constant 0 : index
    %c0_16 = arith.constant 0 : index
    %19 = vector.load %arg7[%c0_15, %c0_16] : memref<8x1xf32, #tpu.memory_space<vmem>>, vector<8x1xf32>
    %20 = vector.broadcast %19 : vector<8x1xf32> to vector<8x128xf32>
    %21 = arith.addf %18, %20 : vector<8x128xf32>
    %c0_17 = arith.constant 0 : index
    %c0_18 = arith.constant 0 : index
    %22 = vector.load %arg8[%c0_17, %c0_18] : memref<8x128xf32, #tpu.memory_space<vmem>>, vector<8x128xf32>
    tpu.vector_store %arg8[%c0_17, %c0_18], %21 {strides = array<i32>} : memref<8x128xf32, #tpu.memory_space<vmem>>, vector<8x128xf32>,
    return
  }
  func.func @transform_0(%arg0: i32) -> (i32, i32) {
    %c0_i32 = arith.constant 0 : i32
    %c0_i32_0 = arith.constant 0 : i32
    return %arg0, %c0_i32 : i32, i32
  }
  func.func @transform_1(%arg0: i32) -> (i32, i32) {
    %c0_i32 = arith.constant 0 : i32
    %c0_i32_0 = arith.constant 0 : i32
    %c0_i32_1 = arith.constant 0 : i32
    return %c0_i32, %c0_i32_0 : i32, i32
  }
  func.func @transform_2(%arg0: i32) -> (i32, i32) {
    %c0_i32 = arith.constant 0 : i32
    %c0_i32_0 = arith.constant 0 : i32
    %c0_i32_1 = arith.constant 0 : i32
    return %c0_i32, %c0_i32_0 : i32, i32
  }
  func.func @transform_3(%arg0: i32) -> (i32, i32) {
    %c0_i32 = arith.constant 0 : i32
    %c0_i32_0 = arith.constant 0 : i32
    %c0_i32_1 = arith.constant 0 : i32
    return %c0_i32, %c0_i32_0 : i32, i32
  }
  func.func @transform_4(%arg0: i32) -> (i32, i32) {
    %c0_i32 = arith.constant 0 : i32
    %c0_i32_0 = arith.constant 0 : i32
    %c0_i32_1 = arith.constant 0 : i32
    return %c0_i32, %c0_i32_0 : i32, i32
  }
  func.func @transform_5(%arg0: i32) -> (i32, i32) {
    %c0_i32 = arith.constant 0 : i32
    %c0_i32_0 = arith.constant 0 : i32
    %c0_i32_1 = arith.constant 0 : i32
    return %c0_i32, %c0_i32_0 : i32, i32
  }
  func.func @transform_6(%arg0: i32) -> (i32, i32) {
    %c0_i32 = arith.constant 0 : i32
    %c0_i32_0 = arith.constant 0 : i32
    %c0_i32_1 = arith.constant 0 : i32
    return %c0_i32, %c0_i32_0 : i32, i32
  }
  func.func @transform_7(%arg0: i32) -> (i32, i32) {
    %c0_i32 = arith.constant 0 : i32
    %c0_i32_0 = arith.constant 0 : i32
    return %c0_i32, %arg0 : i32, i32
  }
}

</mosaic_0001>

<bundles_post_ra>
// kernel: tpu_custom_call.1
= control target key start
LH: loop header
LB: loop body
LE: loop exit
PB: predicated region body
PF: predicated region fallthrough
CT: control target
= control target key end

     0   :  { %12 = vsyncpa [#allocation3], 0  ;;  %s2124_s0 = inlined_call_operand.hbm [shape: bf16[128,768], index: 0, kind: input, shape index: {}]   ;;  %s2125_s1 = inlined_call_operand.hbm [shape: bf16[768,128], index: 1, kind: input, shape index: {}]   ;;  %s2126_s2 = inlined_call_operand.vmem [shape: f32[1,128], index: 2, kind: input, shape index: {}]   ;;  %s2127_s3 = inlined_call_operand.hbm [shape: bf16[128,128], index: 3, kind: input, shape index: {}]   ;;  %s2128_s4 = inlined_call_operand.vmem [shape: f32[1,128], index: 4, kind: input, shape index: {}]   ;;  %s2129_s5 = inlined_call_operand.vmem [shape: bf16[8,128], index: 5, kind: input, shape index: {}]   ;;  %s2130_s6 = inlined_call_operand.vmem [shape: f32[8,1], index: 6, kind: input, shape index: {}]   ;;  %s2131_s7 = inlined_call_operand.hbm [shape: f32[8,128], index: 7, kind: output, shape index: {}]  }
   0x1   :  { %13 = vsyncpa [#allocation6], 0 }
   0x2   :  { %14 = vsyncpa [#allocation4], 0  ;;  %s1944_s24 = smov [#allocation5]   ;;  %s1850_s28 = scalar_lea.hbm %s2125_s1, 6144 }
   0x3   :  { %s32_s25 = sshll.u32 %s1944_s24, 4  ;;  %p1851_p0 = scmp.ne.s32.totalorder %s2125_s1, %s1850_s28  ;;  %s33_s25 = int_to_ptr.vmem [resolvable:$true] %s32_s25 }
   0x4   :  { %p1854_p1 = scmp.lt.u32.totalorder %s1850_s28, %s2125_s1 }
   0x6   :  { %p1856_p2 = pnand %p1854_p1, %p1851_p0 }
   0x8   :  { %1859 = shalt.err (!%p1856_p2)
}
   0x9   :  { %s1860_s10 = scalar_lea.vmem %s33_s25, 6144  ;;  %p1865_p4 = scmp.lt.s32.totalorder %s33_s25, %s33_s25 }
   0xa   :  { %p1861_p3 = scmp.ne.s32.totalorder %s33_s25, %s1860_s10  ;;  %p1866_p5 = scmp.lt.s32.totalorder %s1860_s10, %s1860_s10 }
   0xc   :  { %p1867_p6 = por %p1866_p5, %p1865_p4 }
   0xe   :  { %p1868_p7 = pnand %p1867_p6, %p1861_p3 }
  0x10   :  { %1871 = shalt.err (!%p1868_p7)
}
  0x11   :  { %s1945_s11 = smov 64   ;;  %s1946_s12 = smov 4  }
  0x12   :  { %38 = dma.hbm_to_vmem [thread:$0]  %s2125_s1, 6144, %s33_s25, [#allocation6], %s1945_s11, %s1945_s11, %s1946_s12  }
  0x13   :  { %s1947_s15 = smov [#allocation2]   ;;  %s1872_s19 = scalar_lea.hbm %s2124_s0, 6144 }
  0x14   :  { %s20_s16 = sshll.u32 %s1947_s15, 4  ;;  %p1873_p8 = scmp.ne.s32.totalorder %s2124_s0, %s1872_s19  ;;  %s21_s16 = int_to_ptr.vmem [resolvable:$true] %s20_s16 }
  0x15   :  { %p1876_p9 = scmp.lt.u32.totalorder %s1872_s19, %s2124_s0 }
  0x17   :  { %p1878_p10 = pnand %p1876_p9, %p1873_p8 }
  0x19   :  { %1881 = shalt.err (!%p1878_p10)
}
  0x1a   :  { %s1882_s24 = scalar_lea.vmem %s21_s16, 6144  ;;  %p1887_p12 = scmp.lt.s32.totalorder %s21_s16, %s21_s16 }
  0x1b   :  { %p1883_p11 = scmp.ne.s32.totalorder %s21_s16, %s1882_s24  ;;  %p1888_p13 = scmp.lt.s32.totalorder %s1882_s24, %s1882_s24 }
  0x1d   :  { %p1889_p0 = por %p1888_p13, %p1887_p12 }
  0x1f   :  { %p1890_p1 = pnand %p1889_p0, %p1883_p11 }
  0x21   :  { %1893 = shalt.err (!%p1890_p1)
}
  0x22   :  { %s1948_s1 = smov 384   ;;  %s1949_s25 = smov 24  }
  0x23   :  { %26 = dma.hbm_to_vmem [thread:$0]  %s2124_s0, 6144, %s21_s16, [#allocation3], %s1948_s1, %s1948_s1, %s1949_s25  }
  0x24   :  { %s1950_s28 = smov [#allocation7]   ;;  %s1894_s9 = scalar_lea.hbm %s2127_s3, 1024 }
  0x25   :  { %s46_s29 = sshll.u32 %s1950_s28, 4  ;;  %p1895_p2 = scmp.ne.s32.totalorder %s2127_s3, %s1894_s9  ;;  %s47_s29 = int_to_ptr.vmem [resolvable:$true] %s46_s29 }
  0x26   :  { %p1898_p3 = scmp.lt.u32.totalorder %s1894_s9, %s2127_s3 }
  0x28   :  { %p1900_p4 = pnand %p1898_p3, %p1895_p2 }
  0x2a   :  { %1903 = shalt.err (!%p1900_p4)
}
  0x2b   :  { %s1904_s17 = scalar_lea.vmem %s47_s29, 1024  ;;  %p1909_p6 = scmp.lt.s32.totalorder %s47_s29, %s47_s29 }
  0x2c   :  { %p1905_p5 = scmp.ne.s32.totalorder %s47_s29, %s1904_s17  ;;  %p1910_p7 = scmp.lt.s32.totalorder %s1904_s17, %s1904_s17 }
  0x2e   :  { %p1911_p8 = por %p1910_p7, %p1909_p6 }
  0x30   :  { %p1912_p9 = pnand %p1911_p8, %p1905_p5 }
  0x32   :  { %1915 = shalt.err (!%p1912_p9)
}
  0x33   :  { %52 = dma.hbm_to_vmem [thread:$0]  %s2127_s3, 1024, %s47_s29, [#allocation6], %s1945_s11, %s1945_s11, %s1946_s12  }
  0x34   :  { %1938 = dma.done.wait [#allocation3], 6144  }
  0x35   :  { %1939 = vsyncadd [#allocation3], 4294961152 }
  0x36   :  { %1940 = dma.done.wait [#allocation6], 7168  }
  0x37   :  { %1941 = vsyncadd [#allocation6], 4294960128  ;;  %v1722_v0 = vld [vmem:[#allocation5 + $0x40] sm:$0xff]   ;;  %v1724_v2 = vld [vmem:[#allocation5 + $0x48] sm:$0xff]   ;;  %vm1952_vm0 = vmmov 0   ;;  %s1954_s20 = smov [#allocation8]  }
  0x38   :  { %v1723_v1 = vld [vmem:[#allocation5] sm:$0xff]   ;;  %1425 = vmatprep.subr.bf16.mxu0 %v1722_v0  ;;  %1694 = vmatprep.subr.bf16.mxu1 %v1722_v0  ;;  %v1725_v3 = vld [vmem:[#allocation5 + $0x8] sm:$0xff]   ;;  %v1726_v4 = vld [vmem:[#allocation5 + $0x50] sm:$0xff]   ;;  %s1309_s21 = sshll.u32 %s1954_s20, 4  ;;  %s1310_s21 = int_to_ptr.vmem [resolvable:$true] %s1309_s21 }
  0x39   :  { %1426 = vmatpush3.bf16.msra.mxu0 %v1723_v1  ;;  %1702 = vmatpush3.bf16.msra.mxu1 %v1723_v1  ;;  %v1727_v5 = vld [vmem:[#allocation5 + $0x10] sm:$0xff]   ;;  %v1728_v6 = vld [vmem:[#allocation5 + $0x58] sm:$0xff]   ;;  %v1730_v8 = vld [vmem:[#allocation5 + $0x60] sm:$0xff]   ;;  %s1916_s22 = scalar_lea.vmem %s1310_s21, 128  ;;  %p1921_p11 = scmp.lt.s32.totalorder %s1310_s21, %s1310_s21 }
  0x3a   :  { %1427 = vmatprep.subr.bf16.mxu0 %v1724_v2  ;;  %1695 = vmatprep.subr.bf16.mxu1 %v1724_v2  ;;  %v1729_v7 = vld [vmem:[#allocation5 + $0x18] sm:$0xff]   ;;  %v1731_v9 = vld [vmem:[#allocation5 + $0x20] sm:$0xff]   ;;  %v1732_v10 = vld [vmem:[#allocation5 + $0x68] sm:$0xff]   ;;  %p1917_p10 = scmp.ne.s32.totalorder %s1310_s21, %s1916_s22  ;;  %p1922_p12 = scmp.lt.s32.totalorder %s1916_s22, %s1916_s22 }
  0x3b   :  { %v1740_v11 = vld [vmem:[#allocation2 + $0x4] ss:$24 sps:$4 sm:$0xff]   ;;  %v1733_v13 = vld [vmem:[#allocation5 + $0x28] sm:$0xff]   ;;  %v1734_v14 = vld [vmem:[#allocation5 + $0x70] sm:$0xff]  }
  0x3c   :  { %v1743_v12 = vld [vmem:[#allocation2 + $0xc4] ss:$24 sps:$4 sm:$0xff]   ;;  %780 = vmatprep.mubr.bf16.mxu0 %v1740_v11  ;;  %v1735_v15 = vld [vmem:[#allocation5 + $0x30] sm:$0xff]   ;;  %v1738_v18 = vld [vmem:[#allocation2] ss:$24 sps:$4 sm:$0xff]   ;;  %p1923_p13 = por %p1922_p12, %p1921_p11 }
  0x3d   :  { %1428 = vmatpush3.bf16.msra.mxu0 %v1725_v3  ;;  %1703 = vmatpush3.bf16.msra.mxu1 %v1725_v3  ;;  %v1736_v16 = vld [vmem:[#allocation5 + $0x78] sm:$0xff]   ;;  %v1744_v20 = vld [vmem:[#allocation5 + $0xc0] sm:$0xff]   ;;  %v1748_v24 = vld [vmem:[#allocation5 + $0xc8] sm:$0xff]  }
  0x3e   :  { %1429 = vmatprep.subr.bf16.mxu0 %v1726_v4  ;;  %1696 = vmatprep.subr.bf16.mxu1 %v1726_v4  ;;  %v1737_v17 = vld [vmem:[#allocation5 + $0x38] sm:$0xff]   ;;  %v1745_v21 = vld [vmem:[#allocation5 + $0x140] sm:$0xff]   ;;  %v1749_v25 = vld [vmem:[#allocation5 + $0x148] sm:$0xff]   ;;  %p1924_p0 = pnand %p1923_p13, %p1917_p10 }
  0x3f   :  { %812 = vmatprep.mubr.bf16.mxu1 %v1743_v12  ;;  %v1741_v19 = vld [vmem:[#allocation2 + $0xc0] ss:$24 sps:$4 sm:$0xff]   ;;  %v1752_v26 = vld [vmem:[#allocation2 + $0x34] ss:$24 sps:$4 sm:$0xff]   ;;  %v1756_v31 = vld [vmem:[#allocation2 + $0x30] ss:$24 sps:$4 sm:$0xff]  }
  0x40   :  { %v1746_v22 = vld [vmem:[#allocation5 + $0x80] sm:$0xff]   ;;  %v1750_v27 = vld [vmem:[#allocation5 + $0x88] sm:$0xff]   ;;  %v1758_v30 = vld [vmem:[#allocation5 + $0xd0] sm:$0xff]  }
  0x41   :  { %1430 = vmatpush3.bf16.msra.mxu0 %v1727_v5  ;;  %1704 = vmatpush3.bf16.msra.mxu1 %v1727_v5  ;;  %v1747_v23 = vld [vmem:[#allocation5 + $0x100] sm:$0xff]   ;;  %v1754_v28 = vld [vmem:[#allocation2 + $0xf4] ss:$24 sps:$4 sm:$0xff]   ;;  %v1757_v33 = vld [vmem:[#allocation2 + $0xf0] ss:$24 sps:$4 sm:$0xff]  }
  0x42   :  { %1431 = vmatprep.subr.bf16.mxu0 %v1728_v6  ;;  %1697 = vmatprep.subr.bf16.mxu1 %v1728_v6  ;;  %v1751_v29 = vld [vmem:[#allocation5 + $0x108] sm:$0xff]   ;;  %v1759_v32 = vld [vmem:[#allocation5 + $0x150] sm:$0xff]   ;;  %v1762_v36 = vld [vmem:[#allocation5 + $0xd8] sm:$0xff]  }
  0x43   :  { %v1760_v34 = vld [vmem:[#allocation5 + $0x90] sm:$0xff]   ;;  %v1763_v37 = vld [vmem:[#allocation5 + $0x158] sm:$0xff]   ;;  %v1772_v42 = vld [vmem:[#allocation5 + $0xe0] sm:$0xff]  }
  0x44   :  { %v1761_v35 = vld [vmem:[#allocation5 + $0x110] sm:$0xff]   ;;  %v1766_v38 = vld [vmem:[#allocation2 + $0x64] ss:$24 sps:$4 sm:$0xff]   ;;  %v1770_v43 = vld [vmem:[#allocation2 + $0x60] ss:$24 sps:$4 sm:$0xff]  }
  0x45   :  { %1432 = vmatpush3.bf16.msra.mxu0 %v1729_v7  ;;  %1705 = vmatpush3.bf16.msra.mxu1 %v1729_v7  ;;  %v1764_v39 = vld [vmem:[#allocation5 + $0x98] sm:$0xff]   ;;  %v1773_v45 = vld [vmem:[#allocation5 + $0x160] sm:$0xff]   ;;  %v1776_v48 = vld [vmem:[#allocation5 + $0xe8] sm:$0xff]  }
  0x46   :  { %1433 = vmatprep.subr.bf16.mxu0 %v1730_v8  ;;  %1698 = vmatprep.subr.bf16.mxu1 %v1730_v8  ;;  %v1768_v40 = vld [vmem:[#allocation2 + $0x124] ss:$24 sps:$4 sm:$0xff]   ;;  %v1771_v44 = vld [vmem:[#allocation2 + $0x120] ss:$24 sps:$4 sm:$0xff]   ;;  %v1777_v49 = vld [vmem:[#allocation5 + $0x168] sm:$0xff]  }
  0x47   :  { %v1765_v41 = vld [vmem:[#allocation5 + $0x118] sm:$0xff]   ;;  %v1774_v46 = vld [vmem:[#allocation5 + $0xa0] sm:$0xff]   ;;  %v1780_v50 = vld [vmem:[#allocation2 + $0x94] ss:$24 sps:$4 sm:$0xff]  }
  0x48   :  { %v1775_v47 = vld [vmem:[#allocation5 + $0x120] sm:$0xff]   ;;  %v1782_v51 = vld [vmem:[#allocation2 + $0x154] ss:$24 sps:$4 sm:$0xff]   ;;  %v1784_v55 = vld [vmem:[#allocation2 + $0x90] ss:$24 sps:$4 sm:$0xff]  }
  0x49   :  { %1434 = vmatpush3.bf16.msra.mxu0 %v1731_v9  ;;  %1706 = vmatpush3.bf16.msra.mxu1 %v1731_v9  ;;  %v1778_v52 = vld [vmem:[#allocation5 + $0xa8] sm:$0xff]   ;;  %v1786_v54 = vld [vmem:[#allocation5 + $0xf0] sm:$0xff]   ;;  %v1790_v60 = vld [vmem:[#allocation5 + $0xf8] sm:$0xff]  }
  0x4a   :  { %1435 = vmatprep.subr.bf16.mxu0 %v1732_v10  ;;  %1699 = vmatprep.subr.bf16.mxu1 %v1732_v10  ;;  %v1779_v53 = vld [vmem:[#allocation5 + $0x128] sm:$0xff]   ;;  %v1787_v57 = vld [vmem:[#allocation5 + $0x170] sm:$0xff]   ;;  %v1791_v61 = vld [vmem:[#allocation5 + $0x178] sm:$0xff]  }
  0x4b   :  { %v1785_v56 = vld [vmem:[#allocation2 + $0x150] ss:$24 sps:$4 sm:$0xff]   ;;  %v1792_v62 = vld [vmem:[#allocation5 + $0xb8] sm:$0xff]   ;;  %v1796_v0 = vld [vmem:[#allocation2 + $0xc] ss:$24 sps:$4 sm:$0xff]  }
  0x4c   :  { %v1788_v58 = vld [vmem:[#allocation5 + $0xb0] sm:$0xff]   ;;  %v1793_v63 = vld [vmem:[#allocation5 + $0x138] sm:$0xff]   ;;  %v1794_v1 = vld [vmem:[#allocation2 + $0x8] ss:$24 sps:$4 sm:$0xff]  }
  0x4d   :  { %1436 = vmatpush3.bf16.msra.mxu0 %v1733_v13  ;;  %1707 = vmatpush3.bf16.msra.mxu1 %v1733_v13  ;;  %v1789_v59 = vld [vmem:[#allocation5 + $0x130] sm:$0xff]   ;;  %v1802_v5 = vld [vmem:[#allocation2 + $0x44] ss:$24 sps:$4 sm:$0xff]   ;;  %v1805_v7 = vld [vmem:[#allocation2 + $0x40] ss:$24 sps:$4 sm:$0xff]  }
  0x4e   :  { %1437 = vmatprep.subr.bf16.mxu0 %v1734_v14  ;;  %1700 = vmatprep.subr.bf16.mxu1 %v1734_v14  ;;  %v1799_v2 = vld [vmem:[#allocation2 + $0x14] ss:$24 sps:$4 sm:$0xff]   ;;  %v1797_v3 = vld [vmem:[#allocation2 + $0x10] ss:$24 sps:$4 sm:$0xff]   ;;  %v1814_v13 = vld [vmem:[#allocation2 + $0xa4] ss:$24 sps:$4 sm:$0xff]  }
  0x4f   :  { %v1800_v4 = vld [vmem:[#allocation2 + $0x3c] ss:$24 sps:$4 sm:$0xff]   ;;  %v1804_v6 = vld [vmem:[#allocation2 + $0x38] ss:$24 sps:$4 sm:$0xff]   ;;  %v1806_v8 = vld [vmem:[#allocation2 + $0x6c] ss:$24 sps:$4 sm:$0xff]  }
  0x50   :  { %v1808_v9 = vld [vmem:[#allocation2 + $0x74] ss:$24 sps:$4 sm:$0xff]   ;;  %v1810_v10 = vld [vmem:[#allocation2 + $0x68] ss:$24 sps:$4 sm:$0xff]  }
  0x51   :  { %1438 = vmatpush3.bf16.msra.mxu0 %v1735_v15  ;;  %1708 = vmatpush3.bf16.msra.mxu1 %v1735_v15  ;;  %v1811_v11 = vld [vmem:[#allocation2 + $0x70] ss:$24 sps:$4 sm:$0xff]   ;;  %v1812_v12 = vld [vmem:[#allocation2 + $0x9c] ss:$24 sps:$4 sm:$0xff]   ;;  %v1842_v14 = vld [vmem:[#allocation7] sm:$0xff]  }
  0x52   :  { %1439 = vmatprep.subr.bf16.mxu0 %v1736_v16  ;;  %1701 = vmatprep.subr.bf16.mxu1 %v1736_v16  ;;  %v1843_v15 = vld [vmem:[#allocation7 + $0x8] sm:$0xff]   ;;  %v1816_v16 = vld [vmem:[#allocation2 + $0x98] ss:$24 sps:$4 sm:$0xff]  }
  0x55   :  { %1440 = vmatpush3.bf16.msra.mxu0 %v1737_v17  ;;  %1709 = vmatpush3.bf16.msra.mxu1 %v1737_v17  ;;  %v1817_v17 = vld [vmem:[#allocation2 + $0xa0] ss:$24 sps:$4 sm:$0xff]  }
  0x56   :  { %1489 = vmatprep.subr.bf16.mxu1 %v1744_v20  ;;  %1553 = vmatprep.subr.bf16.mxu0 %v1745_v21  ;;  %v1822_v20 = vld [vmem:[#allocation2 + $0xc8] ss:$24 sps:$4 sm:$0xff]  }
  0x57   :  { %v1823_v21 = vld [vmem:[#allocation2 + $0xd0] ss:$24 sps:$4 sm:$0xff]  }
  0x58   :  { %781 = vmatmul.mubr.bf16.vlgmr.msra.gmra.mrb[0].mxu0 %v1738_v18  ;;  %813 = vmatmul.mubr.bf16.vlgmr.msra.gmra.mrb[0].mxu1 %v1741_v19  ;;  %v1818_v18 = vld [vmem:[#allocation2 + $0xcc] ss:$24 sps:$4 sm:$0xff]  }
  0x59   :  { %1490 = vmatpush3.bf16.msra.mxu1 %v1746_v22  ;;  %1554 = vmatpush3.bf16.msra.mxu0 %v1747_v23  ;;  %v1820_v19 = vld [vmem:[#allocation2 + $0xd4] ss:$24 sps:$4 sm:$0xff]   ;;  %v1826_v23 = vld [vmem:[#allocation2 + $0x104] ss:$24 sps:$4 sm:$0xff]  }
  0x5a   :  { %1491 = vmatprep.subr.bf16.mxu1 %v1748_v24  ;;  %1555 = vmatprep.subr.bf16.mxu0 %v1749_v25  ;;  %v1824_v22 = vld [vmem:[#allocation2 + $0xfc] ss:$24 sps:$4 sm:$0xff]   ;;  %v1828_v24 = vld [vmem:[#allocation2 + $0xf8] ss:$24 sps:$4 sm:$0xff]  }
  0x5b   :  { %788 = vmatprep.mubr.bf16.mxu0 %v1752_v26  ;;  %820 = vmatprep.mubr.bf16.mxu1 %v1754_v28  ;;  %v1829_v25 = vld [vmem:[#allocation2 + $0x100] ss:$24 sps:$4 sm:$0xff]   ;;  %v1830_v26 = vld [vmem:[#allocation2 + $0x12c] ss:$24 sps:$4 sm:$0xff]  }
  0x5c   :  { %v1834_v28 = vld [vmem:[#allocation2 + $0x128] ss:$24 sps:$4 sm:$0xff]  }
  0x5d   :  { %1492 = vmatpush3.bf16.msra.mxu1 %v1750_v27  ;;  %1556 = vmatpush3.bf16.msra.mxu0 %v1751_v29  ;;  %v1832_v27 = vld [vmem:[#allocation2 + $0x134] ss:$24 sps:$4 sm:$0xff]   ;;  %v1835_v29 = vld [vmem:[#allocation2 + $0x130] ss:$24 sps:$4 sm:$0xff]  }
  0x5e   :  { %1493 = vmatprep.subr.bf16.mxu1 %v1758_v30  ;;  %1557 = vmatprep.subr.bf16.mxu0 %v1759_v32  ;;  %v1836_v30 = vld [vmem:[#allocation2 + $0x15c] ss:$24 sps:$4 sm:$0xff]   ;;  %v1840_v32 = vld [vmem:[#allocation2 + $0x158] ss:$24 sps:$4 sm:$0xff]  }
  0x60   :  { %789 = vmatmul.mubr.bf16.gmra.mrb[4].mxu0 %v1756_v31  ;;  %821 = vmatmul.mubr.bf16.gmra.mrb[4].mxu1 %v1757_v33  ;;  %v1838_v31 = vld [vmem:[#allocation2 + $0x164] ss:$24 sps:$4 sm:$0xff]   ;;  %v1841_v33 = vld [vmem:[#allocation2 + $0x160] ss:$24 sps:$4 sm:$0xff]  }
  0x61   :  { %1494 = vmatpush3.bf16.msra.mxu1 %v1760_v34  ;;  %1558 = vmatpush3.bf16.msra.mxu0 %v1761_v35  ;;  %v1844_v34 = vld [vmem:[#allocation7 + $0x10] sm:$0xff]   ;;  %v1845_v35 = vld [vmem:[#allocation7 + $0x18] sm:$0xff]  }
  0x62   :  { %1495 = vmatprep.subr.bf16.mxu1 %v1762_v36  ;;  %1559 = vmatprep.subr.bf16.mxu0 %v1763_v37  ;;  %v1846_v36 = vld [vmem:[#allocation7 + $0x20] sm:$0xff]   ;;  %v1847_v37 = vld [vmem:[#allocation7 + $0x28] sm:$0xff]  }
  0x63   :  { %796 = vmatprep.mubr.bf16.mxu0 %v1766_v38  ;;  %828 = vmatprep.mubr.bf16.mxu1 %v1768_v40  ;;  %v1848_v38 = vld [vmem:[#allocation7 + $0x30] sm:$0xff]  }
  0x65   :  { %1496 = vmatpush3.bf16.msra.mxu1 %v1764_v39  ;;  %1560 = vmatpush3.bf16.msra.mxu0 %v1765_v41  ;;  %v1849_v39 = vld [vmem:[#allocation7 + $0x38] sm:$0xff]  }
  0x66   :  { %1497 = vmatprep.subr.bf16.mxu1 %v1772_v42  ;;  %1561 = vmatprep.subr.bf16.mxu0 %v1773_v45 }
  0x68   :  { %797 = vmatmul.mubr.bf16.gmra.mrb[8].mxu0 %v1770_v43  ;;  %829 = vmatmul.mubr.bf16.gmra.mrb[8].mxu1 %v1771_v44 }
  0x69   :  { %1498 = vmatpush3.bf16.msra.mxu1 %v1774_v46  ;;  %1562 = vmatpush3.bf16.msra.mxu0 %v1775_v47 }
  0x6a   :  { %1499 = vmatprep.subr.bf16.mxu1 %v1776_v48  ;;  %1563 = vmatprep.subr.bf16.mxu0 %v1777_v49 }
  0x6b   :  { %804 = vmatprep.mubr.bf16.mxu0 %v1780_v50  ;;  %836 = vmatprep.mubr.bf16.mxu1 %v1782_v51 }
  0x6d   :  { %1500 = vmatpush3.bf16.msra.mxu1 %v1778_v52  ;;  %1564 = vmatpush3.bf16.msra.mxu0 %v1779_v53 }
  0x6e   :  { %1501 = vmatprep.subr.bf16.mxu1 %v1786_v54  ;;  %1565 = vmatprep.subr.bf16.mxu0 %v1787_v57 }
  0x70   :  { %805 = vmatmul.mubr.bf16.gmra.mrb[12].mxu0 %v1784_v55  ;;  %837 = vmatmul.mubr.bf16.gmra.mrb[12].mxu1 %v1785_v56 }
  0x71   :  { %1502 = vmatpush3.bf16.msra.mxu1 %v1788_v58  ;;  %1566 = vmatpush3.bf16.msra.mxu0 %v1789_v59 }
  0x72   :  { %1503 = vmatprep.subr.bf16.mxu1 %v1790_v60  ;;  %1567 = vmatprep.subr.bf16.mxu0 %v1791_v61 }
  0x73   :  { %877 = vmatprep.mubr.bf16.mxu1 %v1796_v0  ;;  %974 = vmatprep.mubr.bf16.mxu0 %v1799_v2 }
  0x75   :  { %1504 = vmatpush3.bf16.msra.mxu1 %v1792_v62  ;;  %1568 = vmatpush3.bf16.msra.mxu0 %v1793_v63 }
  0x76   :  { %1642 = vmatprep.subr.bf16.mxu1 %v1842_v14 }
  0x78   :  { %878 = vmatmul.mubr.bf16.vlgmr.msra.gmra.mrb[16].mxu1 %v1794_v1  ;;  %975 = vmatmul.mubr.bf16.vlgmr.msra.gmra.mrb[16].mxu0 %v1797_v3 }
  0x79   :  { %885 = vmatprep.mubr.bf16.mxu1 %v1800_v4  ;;  %982 = vmatprep.mubr.bf16.mxu0 %v1802_v5 }
  0x7a   :  { %1643 = vmatpush3.bf16.msra.mxu1 %v1842_v14 }
  0x7b   :  { %1644 = vmatprep.subr.bf16.mxu1 %v1843_v15 }
  0x7e   :  { %1645 = vmatpush3.bf16.msra.mxu1 %v1843_v15 }
  0x7f   :  { %1646 = vmatprep.subr.bf16.mxu1 %v1844_v34 }
  0x80   :  { %886 = vmatmul.mubr.bf16.gmra.mrb[20].mxu1 %v1804_v6  ;;  %983 = vmatmul.mubr.bf16.gmra.mrb[20].mxu0 %v1805_v7 }
  0x81   :  { %893 = vmatprep.mubr.bf16.mxu1 %v1806_v8  ;;  %990 = vmatprep.mubr.bf16.mxu0 %v1808_v9 }
  0x82   :  { %1647 = vmatpush3.bf16.msra.mxu1 %v1844_v34 }
  0x83   :  { %1648 = vmatprep.subr.bf16.mxu1 %v1845_v35 }
  0x86   :  { %1649 = vmatpush3.bf16.msra.mxu1 %v1845_v35 }
  0x87   :  { %1650 = vmatprep.subr.bf16.mxu1 %v1846_v36 }
  0x88   :  { %894 = vmatmul.mubr.bf16.gmra.mrb[24].mxu1 %v1810_v10  ;;  %991 = vmatmul.mubr.bf16.gmra.mrb[24].mxu0 %v1811_v11 }
  0x89   :  { %901 = vmatprep.mubr.bf16.mxu1 %v1812_v12  ;;  %998 = vmatprep.mubr.bf16.mxu0 %v1814_v13 }
  0x8a   :  { %1651 = vmatpush3.bf16.msra.mxu1 %v1846_v36 }
  0x8b   :  { %1652 = vmatprep.subr.bf16.mxu1 %v1847_v37 }
  0x8e   :  { %1653 = vmatpush3.bf16.msra.mxu1 %v1847_v37 }
  0x8f   :  { %1654 = vmatprep.subr.bf16.mxu1 %v1848_v38 }
  0x90   :  { %902 = vmatmul.mubr.bf16.gmra.mrb[28].mxu1 %v1816_v16  ;;  %999 = vmatmul.mubr.bf16.gmra.mrb[28].mxu0 %v1817_v17 }
  0x91   :  { %909 = vmatprep.mubr.bf16.mxu1 %v1818_v18  ;;  %1006 = vmatprep.mubr.bf16.mxu0 %v1820_v19 }
  0x92   :  { %1655 = vmatpush3.bf16.msra.mxu1 %v1848_v38 }
  0x93   :  { %1656 = vmatprep.subr.bf16.mxu1 %v1849_v39 }
  0x96   :  { %1657 = vmatpush3.bf16.msra.mxu1 %v1849_v39 }
  0x98   :  { %910 = vmatmul.mubr.bf16.gmra.mrb[32].mxu1 %v1822_v20  ;;  %1007 = vmatmul.mubr.bf16.gmra.mrb[32].mxu0 %v1823_v21 }
  0x99   :  { %917 = vmatprep.mubr.bf16.mxu1 %v1824_v22  ;;  %1014 = vmatprep.mubr.bf16.mxu0 %v1826_v23 }
  0xa0   :  { %918 = vmatmul.mubr.bf16.gmra.mrb[36].mxu1 %v1828_v24  ;;  %1015 = vmatmul.mubr.bf16.gmra.mrb[36].mxu0 %v1829_v25  ;;  %v2064_v24 = vld [vmem:[%s2126_s2] ss:$0 sm:$0xff] }
  0xa1   :  { %925 = vmatprep.mubr.bf16.mxu1 %v1830_v26  ;;  %1022 = vmatprep.mubr.bf16.mxu0 %v1832_v27 }
  0xa8   :  { %926 = vmatmul.mubr.bf16.gmra.mrb[40].mxu1 %v1834_v28  ;;  %1023 = vmatmul.mubr.bf16.gmra.mrb[40].mxu0 %v1835_v29 }
  0xa9   :  { %933 = vmatprep.mubr.bf16.mxu1 %v1836_v30  ;;  %1030 = vmatprep.mubr.bf16.mxu0 %v1838_v31 }
  0xb0   :  { %934 = vmatmul.mubr.bf16.gmra.mrb[44].mxu1 %v1840_v32  ;;  %1031 = vmatmul.mubr.bf16.gmra.mrb[44].mxu0 %v1841_v33 }
 0x12b   :  { %v1441_v40 = vpop.f32.mrb[0].mxu0  ;;  %v1465_v41 = vpop.f32.mrb[0].mxu1 }
 0x12c   :  { %v1442_v42 = vpop.f32.mrb[1].mxu0  ;;  %v1466_v43 = vpop.f32.mrb[1].mxu1 }
 0x12d   :  { %v1443_v44 = vadd.f32 %v1442_v42, %v1441_v40  ;;  %v2037_v45 = vadd.f32 %v1466_v43, %v1465_v41  ;;  %v1444_v46 = vpop.f32.mrb[2].mxu0  ;;  %v1468_v47 = vpop.f32.mrb[2].mxu1 }
 0x12e   :  { %v1445_v48 = vpop.f32.mrb[3].mxu0  ;;  %v1469_v49 = vpop.f32.mrb[3].mxu1 }
 0x12f   :  { %v1446_v50 = vadd.f32 %v1445_v48, %v1444_v46  ;;  %v2039_v51 = vadd.f32 %v1469_v49, %v1468_v47  ;;  %v783_v29 = vadd.f32 %v1443_v44, %v2064_v24 }
 0x131   :  { %v786_v36 = vadd.f32 %v1446_v50, %v2064_v24 }
 0x133   :  { %v1447_v52 = vpop.f32.mrb[4].mxu0  ;;  %v1471_v53 = vpop.f32.mrb[4].mxu1 }
 0x134   :  { %v1448_v54 = vpop.f32.mrb[5].mxu0  ;;  %v1472_v55 = vpop.f32.mrb[5].mxu1 }
 0x135   :  { %v1449_v56 = vadd.f32 %v1448_v54, %v1447_v52  ;;  %v2041_v57 = vadd.f32 %v1472_v55, %v1471_v53  ;;  %v1450_v58 = vpop.f32.mrb[6].mxu0  ;;  %v1474_v59 = vpop.f32.mrb[6].mxu1 }
 0x136   :  { %v1451_v60 = vpop.f32.mrb[7].mxu0  ;;  %v1475_v61 = vpop.f32.mrb[7].mxu1 }
 0x137   :  { %v1452_v62 = vadd.f32 %v1451_v60, %v1450_v58  ;;  %v2043_v63 = vadd.f32 %v1475_v61, %v1474_v59  ;;  %v791_v47 = vadd.f32 %v1449_v56, %v2064_v24 }
 0x139   :  { %v794_v50 = vadd.f32 %v1452_v62, %v2064_v24 }
 0x13b   :  { %v1453_v0 = vpop.f32.mrb[8].mxu0  ;;  %v1477_v1 = vpop.f32.mrb[8].mxu1 }
 0x13c   :  { %v1454_v2 = vpop.f32.mrb[9].mxu0  ;;  %v1478_v3 = vpop.f32.mrb[9].mxu1 }
 0x13d   :  { %v2045_v4 = vadd.f32 %v1454_v2, %v1453_v0  ;;  %v2047_v5 = vadd.f32 %v1478_v3, %v1477_v1  ;;  %v1456_v6 = vpop.f32.mrb[10].mxu0  ;;  %v1480_v7 = vpop.f32.mrb[10].mxu1 }
 0x13e   :  { %v1457_v8 = vpop.f32.mrb[11].mxu0  ;;  %v1481_v9 = vpop.f32.mrb[11].mxu1 }
 0x13f   :  { %v2049_v10 = vadd.f32 %v1457_v8, %v1456_v6  ;;  %v2051_v11 = vadd.f32 %v1481_v9, %v1480_v7  ;;  %v799_v9 = vadd.f32 %v2045_v4, %v2064_v24 }
 0x143   :  { %v1459_v12 = vpop.f32.mrb[12].mxu0  ;;  %v1483_v13 = vpop.f32.mrb[12].mxu1 }
 0x144   :  { %v1460_v14 = vpop.f32.mrb[13].mxu0  ;;  %v1484_v15 = vpop.f32.mrb[13].mxu1 }
 0x145   :  { %v2053_v16 = vadd.f32 %v1460_v14, %v1459_v12  ;;  %v2055_v17 = vadd.f32 %v1484_v15, %v1483_v13  ;;  %v1462_v18 = vpop.f32.mrb[14].mxu0  ;;  %v1486_v19 = vpop.f32.mrb[14].mxu1 }
 0x146   :  { %v1463_v20 = vpop.f32.mrb[15].mxu0  ;;  %v1487_v21 = vpop.f32.mrb[15].mxu1 }
 0x147   :  { %v2057_v22 = vadd.f32 %v1463_v20, %v1462_v18  ;;  %v2059_v23 = vadd.f32 %v1487_v21, %v1486_v19  ;;  %v802_v21 = vadd.f32 %v2049_v10, %v2064_v24 }
 0x14b   :  { %v1505_v25 = vpop.f32.mrb[16].mxu1  ;;  %v1569_v26 = vpop.f32.mrb[16].mxu0 }
 0x14c   :  { %v1506_v27 = vpop.f32.mrb[17].mxu1  ;;  %v1570_v28 = vpop.f32.mrb[17].mxu0 }
 0x14d   :  { %v1507_v30 = vadd.f32 %v1506_v27, %v1505_v25  ;;  %v1571_v31 = vadd.f32 %v1570_v28, %v1569_v26  ;;  %v1508_v32 = vpop.f32.mrb[18].mxu1  ;;  %v1572_v33 = vpop.f32.mrb[18].mxu0 }
 0x14e   :  { %v1509_v34 = vpop.f32.mrb[19].mxu1  ;;  %v1573_v35 = vpop.f32.mrb[19].mxu0 }
 0x14f   :  { %v880_v37 = vadd.f32 %v1507_v30, %v783_v29  ;;  %v1510_v38 = vadd.f32 %v1509_v34, %v1508_v32  ;;  %v1574_v39 = vadd.f32 %v1573_v35, %v1572_v33  ;;  %v807_v35 = vadd.f32 %v2053_v16, %v2064_v24 }
 0x151   :  { %v977_v40 = vadd.f32 %v1571_v31, %v880_v37  ;;  %v883_v41 = vadd.f32 %v1510_v38, %v786_v36 }
 0x153   :  { %v980_v42 = vadd.f32 %v1574_v39, %v883_v41  ;;  %v1511_v43 = vpop.f32.mrb[20].mxu1  ;;  %v1575_v46 = vpop.f32.mrb[20].mxu0  ;;  %v1039_v49 = vmax.f32 %v977_v40, 0.0 }
 0x154   :  { %v1512_v48 = vpop.f32.mrb[21].mxu1  ;;  %v1576_v44 = vpop.f32.mrb[21].mxu0 }
 0x155   :  { %v1040_v52 = vmax.f32 %v980_v42, 0.0  ;;  %v1513_v53 = vadd.f32 %v1512_v48, %v1511_v43  ;;  %v1577_v54 = vadd.f32 %v1576_v44, %v1575_v46  ;;  %v1514_v55 = vpop.f32.mrb[22].mxu1  ;;  %v1578_v58 = vpop.f32.mrb[22].mxu0  ;;  %v810_v43 = vadd.f32 %v2057_v22, %v2064_v24 }
 0x156   :  { %v1515_v59 = vpop.f32.mrb[23].mxu1  ;;  %v1579_v60 = vpop.f32.mrb[23].mxu0 }
 0x157   :  { %v888_v61 = vadd.f32 %v1513_v53, %v791_v47  ;;  %v1516_v0 = vadd.f32 %v1515_v59, %v1514_v55  ;;  %v1580_v1 = vadd.f32 %v1579_v60, %v1578_v58  ;;  %v1055_v2 = vpack.c.bf16 %v1040_v52, %v1039_v49 }
 0x159   :  { %v985_v3 = vadd.f32 %v1577_v54, %v888_v61  ;;  %v891_v6 = vadd.f32 %v1516_v0, %v794_v50  ;;  %1658 = vmatprep.mubr.bf16.mxu1 %v1055_v2  ;;  %v815_v50 = vadd.f32 %v2037_v45, %v2064_v24 }
 0x15b   :  { %v988_v56 = vadd.f32 %v1580_v1, %v891_v6  ;;  %v1517_v7 = vpop.f32.mrb[24].mxu1  ;;  %v1581_v8 = vpop.f32.mrb[24].mxu0  ;;  %v1041_v14 = vmax.f32 %v985_v3, 0.0  ;;  %v818_v6 = vadd.f32 %v2039_v51, %v2064_v24 }
 0x15c   :  { %v1518_v12 = vpop.f32.mrb[25].mxu1  ;;  %v1582_v13 = vpop.f32.mrb[25].mxu0 }
 0x15d   :  { %v1042_v15 = vmax.f32 %v988_v56, 0.0  ;;  %v1519_v62 = vadd.f32 %v1518_v12, %v1517_v7  ;;  %v1583_v18 = vadd.f32 %v1582_v13, %v1581_v8  ;;  %v1520_v19 = vpop.f32.mrb[26].mxu1  ;;  %v1584_v20 = vpop.f32.mrb[26].mxu0 }
 0x15e   :  { %v1521_v25 = vpop.f32.mrb[27].mxu1  ;;  %v1585_v26 = vpop.f32.mrb[27].mxu0 }
 0x15f   :  { %v1056_v27 = vpack.c.bf16 %v1042_v15, %v1041_v14  ;;  %v896_v28 = vadd.f32 %v1519_v62, %v799_v9  ;;  %v1522_v29 = vadd.f32 %v1521_v25, %v1520_v19  ;;  %v1586_v30 = vadd.f32 %v1585_v26, %v1584_v20 }
 0x160   :  { %v823_v19 = vadd.f32 %v2041_v57, %v2064_v24 }
 0x161   :  { %v993_v31 = vadd.f32 %v1583_v18, %v896_v28  ;;  %v899_v32 = vadd.f32 %v1522_v29, %v802_v21  ;;  %1659 = vmatmul.mubr.bf16.vlgmr.msra.gmra.mrb[48].mxu1 %v1056_v27 }
 0x163   :  { %v996_v4 = vadd.f32 %v1586_v30, %v899_v32  ;;  %v1523_v33 = vpop.f32.mrb[28].mxu1  ;;  %v1587_v34 = vpop.f32.mrb[28].mxu0  ;;  %v1043_v38 = vmax.f32 %v993_v31, 0.0  ;;  %v826_v30 = vadd.f32 %v2043_v63, %v2064_v24 }
 0x164   :  { %v1524_v36 = vpop.f32.mrb[29].mxu1  ;;  %v1588_v37 = vpop.f32.mrb[29].mxu0 }
 0x165   :  { %v1044_v39 = vmax.f32 %v996_v4, 0.0  ;;  %v1525_v10 = vadd.f32 %v1524_v36, %v1523_v33  ;;  %v1589_v40 = vadd.f32 %v1588_v37, %v1587_v34  ;;  %v1526_v41 = vpop.f32.mrb[30].mxu1  ;;  %v1590_v42 = vpop.f32.mrb[30].mxu0 }
 0x166   :  { %v1527_v46 = vpop.f32.mrb[31].mxu1  ;;  %v1591_v47 = vpop.f32.mrb[31].mxu0 }
 0x167   :  { %v904_v48 = vadd.f32 %v1525_v10, %v807_v35  ;;  %v1528_v44 = vadd.f32 %v1527_v46, %v1526_v41  ;;  %v1592_v49 = vadd.f32 %v1591_v47, %v1590_v42  ;;  %v1057_v52 = vpack.c.bf16 %v1044_v39, %v1043_v38 }
 0x168   :  { %v831_v10 = vadd.f32 %v2047_v5, %v2064_v24 }
 0x169   :  { %v1001_v53 = vadd.f32 %v1589_v40, %v904_v48  ;;  %v907_v54 = vadd.f32 %v1528_v44, %v810_v43  ;;  %1662 = vmatprep.mubr.bf16.mxu1 %v1057_v52  ;;  %v834_v44 = vadd.f32 %v2051_v11, %v2064_v24 }
 0x16b   :  { %v1004_v16 = vadd.f32 %v1592_v49, %v907_v54  ;;  %v1529_v55 = vpop.f32.mrb[32].mxu1  ;;  %v1593_v58 = vpop.f32.mrb[32].mxu0  ;;  %v1045_v61 = vmax.f32 %v1001_v53, 0.0 }
 0x16c   :  { %v1530_v59 = vpop.f32.mrb[33].mxu1  ;;  %v1594_v60 = vpop.f32.mrb[33].mxu0 }
 0x16d   :  { %v1046_v0 = vmax.f32 %v1004_v16, 0.0  ;;  %v1531_v22 = vadd.f32 %v1530_v59, %v1529_v55  ;;  %v1595_v1 = vadd.f32 %v1594_v60, %v1593_v58  ;;  %v1532_v2 = vpop.f32.mrb[34].mxu1  ;;  %v1596_v3 = vpop.f32.mrb[34].mxu0 }
 0x16e   :  { %v1533_v56 = vpop.f32.mrb[35].mxu1  ;;  %v1597_v7 = vpop.f32.mrb[35].mxu0 }
 0x16f   :  { %v912_v8 = vadd.f32 %v1531_v22, %v815_v50  ;;  %v1534_v9 = vadd.f32 %v1533_v56, %v1532_v2  ;;  %v1598_v12 = vadd.f32 %v1597_v7, %v1596_v3  ;;  %v1058_v13 = vpack.c.bf16 %v1046_v0, %v1045_v61 }
 0x170   :  { %v839_v61 = vadd.f32 %v2055_v17, %v2064_v24  ;;  %v842_v7 = vadd.f32 %v2059_v23, %v2064_v24  ;;  %v1256_v23 = vld [vmem:[%s2130_s6] sm:$0xff]  ;;  %v1953_v24 = vmov 0  }
 0x171   :  { %v1009_v14 = vadd.f32 %v1595_v1, %v912_v8  ;;  %v915_v15 = vadd.f32 %v1534_v9, %v818_v6  ;;  %1663 = vmatmul.mubr.bf16.gmra.mrb[52].mxu1 %v1058_v13  ;;  %1721 = vset.pattern.permute.xlu0 %v1953_v24 }
 0x172   :  { %1259 = vperm.xlu0 %1721, %v1256_v23  }
 0x173   :  { %v1012_v45 = vadd.f32 %v1598_v12, %v915_v15  ;;  %v1535_v62 = vpop.f32.mrb[36].mxu1  ;;  %v1599_v18 = vpop.f32.mrb[36].mxu0  ;;  %v1047_v25 = vmax.f32 %v1009_v14, 0.0 }
 0x174   :  { %v1536_v20 = vpop.f32.mrb[37].mxu1  ;;  %v1600_v21 = vpop.f32.mrb[37].mxu0 }
 0x175   :  { %v1048_v26 = vmax.f32 %v1012_v45, 0.0  ;;  %v1537_v51 = vadd.f32 %v1536_v20, %v1535_v62  ;;  %v1601_v27 = vadd.f32 %v1600_v21, %v1599_v18  ;;  %v1538_v28 = vpop.f32.mrb[38].mxu1  ;;  %v1602_v29 = vpop.f32.mrb[38].mxu0  ;;  %v1951_v21 = vmov 0.0  }
 0x176   :  { %v1539_v31 = vpop.f32.mrb[39].mxu1  ;;  %v1603_v32 = vpop.f32.mrb[39].mxu0  ;;  %1674 = vmatprep.subr.bf16.mxu0 %v1951_v21  ;;  %1690 = vmatprep.mubr.msk.bf16.mxu0 %vm1952_vm0, %v1951_v21 }
 0x177   :  { %v920_v4 = vadd.f32 %v1537_v51, %v823_v19  ;;  %v1540_v33 = vadd.f32 %v1539_v31, %v1538_v28  ;;  %v1604_v34 = vadd.f32 %v1603_v32, %v1602_v29  ;;  %v1059_v35 = vpack.c.bf16 %v1048_v26, %v1047_v25  ;;  %v1416_v25 = vld [vmem:[%s2128_s4] ss:$0 sm:$0xff] }
 0x179   :  { %v1017_v36 = vadd.f32 %v1601_v27, %v920_v4  ;;  %v923_v37 = vadd.f32 %v1540_v33, %v826_v30  ;;  %1666 = vmatprep.mubr.bf16.mxu1 %v1059_v35 }
 0x17b   :  { %v1020_v57 = vadd.f32 %v1604_v34, %v923_v37  ;;  %v1541_v38 = vpop.f32.mrb[40].mxu1  ;;  %v1605_v39 = vpop.f32.mrb[40].mxu0  ;;  %v1049_v42 = vmax.f32 %v1017_v36, 0.0 }
 0x17c   :  { %v1542_v40 = vpop.f32.mrb[41].mxu1  ;;  %v1606_v41 = vpop.f32.mrb[41].mxu0 }
 0x17d   :  { %v1050_v43 = vmax.f32 %v1020_v57, 0.0  ;;  %v1543_v63 = vadd.f32 %v1542_v40, %v1541_v38  ;;  %v1607_v46 = vadd.f32 %v1606_v41, %v1605_v39  ;;  %v1544_v47 = vpop.f32.mrb[42].mxu1  ;;  %v1608_v48 = vpop.f32.mrb[42].mxu0 }
 0x17e   :  { %v1545_v49 = vpop.f32.mrb[43].mxu1  ;;  %v1609_v52 = vpop.f32.mrb[43].mxu0 }
 0x17f   :  { %v928_v53 = vadd.f32 %v1543_v63, %v831_v10  ;;  %v1546_v54 = vadd.f32 %v1545_v49, %v1544_v47  ;;  %v1610_v16 = vadd.f32 %v1609_v52, %v1608_v48  ;;  %v1060_v55 = vpack.c.bf16 %v1050_v43, %v1049_v42 }
 0x181   :  { %v1025_v58 = vadd.f32 %v1607_v46, %v928_v53  ;;  %v931_v50 = vadd.f32 %v1546_v54, %v834_v44  ;;  %1667 = vmatmul.mubr.bf16.gmra.mrb[56].mxu1 %v1060_v55 }
 0x183   :  { %v1028_v5 = vadd.f32 %v1610_v16, %v931_v50  ;;  %v1547_v59 = vpop.f32.mrb[44].mxu1  ;;  %v1611_v60 = vpop.f32.mrb[44].mxu0  ;;  %v1051_v1 = vmax.f32 %v1025_v58, 0.0 }
 0x184   :  { %v1548_v0 = vpop.f32.mrb[45].mxu1  ;;  %v1612_v22 = vpop.f32.mrb[45].mxu0 }
 0x185   :  { %v1052_v2 = vmax.f32 %v1028_v5, 0.0  ;;  %v1549_v11 = vadd.f32 %v1548_v0, %v1547_v59  ;;  %v1613_v3 = vadd.f32 %v1612_v22, %v1611_v60  ;;  %v1550_v6 = vpop.f32.mrb[46].mxu1  ;;  %v1614_v56 = vpop.f32.mrb[46].mxu0 }
 0x186   :  { %v1551_v8 = vpop.f32.mrb[47].mxu1  ;;  %v1615_v9 = vpop.f32.mrb[47].mxu0 }
 0x187   :  { %v936_v12 = vadd.f32 %v1549_v11, %v839_v61  ;;  %v1552_v13 = vadd.f32 %v1551_v8, %v1550_v6  ;;  %v1616_v14 = vadd.f32 %v1615_v9, %v1614_v56  ;;  %v1061_v15 = vpack.c.bf16 %v1052_v2, %v1051_v1 }
 0x189   :  { %v1033_v45 = vadd.f32 %v1613_v3, %v936_v12  ;;  %v939_v62 = vadd.f32 %v1552_v13, %v842_v7  ;;  %1670 = vmatprep.mubr.bf16.mxu1 %v1061_v15 }
 0x18b   :  { %v1036_v17 = vadd.f32 %v1616_v14, %v939_v62  ;;  %v1053_v18 = vmax.f32 %v1033_v45, 0.0 }
 0x18d   :  { %v1054_v19 = vmax.f32 %v1036_v17, 0.0  ;;  %v1247_v17 = vld [vmem:[%s2129_s5] sm:$0xf] }
 0x18f   :  { %v1062_v20 = vpack.c.bf16 %v1054_v19, %v1053_v18 }
 0x191   :  { %1671 = vmatmul.mubr.bf16.gmra.mrb[60].mxu1 %v1062_v20 }
 0x1f1   :  { %v1260_v18 = vpop.permute.xlu0 %1259 }
 0x234   :  { %v1660_v26 = vpop.f32.mrb[48].mxu1 }
 0x235   :  { %v1177_v51 = vadd.f32 %v1660_v26, %v1416_v25  ;;  %v1168_v27 = vpop.f32.mrb[49].mxu1 }
 0x236   :  { %v1169_v28 = vadd.f32 %v1416_v25, %v1168_v27  ;;  %v1661_v29 = vpop.f32.mrb[50].mxu1 }
 0x237   :  { %v1180_v30 = vadd.f32 %v1661_v29, %v1416_v25  ;;  %v1171_v31 = vpop.f32.mrb[51].mxu1  ;;  %v1233_v4 = vmax.f32 %v1177_v51, 0.0 }
 0x238   :  { %v1172_v32 = vadd.f32 %v1416_v25, %v1171_v31  ;;  %v1231_v34 = vmax.f32 %v1169_v28, 0.0 }
 0x239   :  { %v1234_v33 = vmax.f32 %v1180_v30, 0.0 }
 0x23a   :  { %v1232_v35 = vmax.f32 %v1172_v32, 0.0 }
 0x23b   :  { %v1249_v36 = vpack.c.bf16 %v1234_v33, %v1233_v4 }
 0x23c   :  { %v1248_v37 = vpack.c.bf16 %v1232_v35, %v1231_v34 }
 0x23e   :  { %1675 = vmatpush3.bf16.xpose.msra.mxu0 %v1248_v37 }
 0x23f   :  { %1676 = vmatprep.subr.bf16.mxu0 %v1951_v21 }
 0x244   :  { %v1664_v57 = vpop.f32.mrb[52].mxu1 }
 0x245   :  { %v1193_v38 = vadd.f32 %v1664_v57, %v1416_v25  ;;  %v1184_v39 = vpop.f32.mrb[53].mxu1 }
 0x246   :  { %v1185_v10 = vadd.f32 %v1416_v25, %v1184_v39  ;;  %v1665_v40 = vpop.f32.mrb[54].mxu1  ;;  %1677 = vmatpush3.bf16.xpose.msra.mxu0 %v1249_v36 }
 0x247   :  { %v1196_v41 = vadd.f32 %v1665_v40, %v1416_v25  ;;  %v1187_v42 = vpop.f32.mrb[55].mxu1  ;;  %1678 = vmatprep.subr.bf16.mxu0 %v1951_v21  ;;  %v1237_v63 = vmax.f32 %v1193_v38, 0.0 }
 0x248   :  { %v1188_v43 = vadd.f32 %v1416_v25, %v1187_v42  ;;  %v1235_v47 = vmax.f32 %v1185_v10, 0.0 }
 0x249   :  { %v1238_v46 = vmax.f32 %v1196_v41, 0.0 }
 0x24a   :  { %v1236_v48 = vmax.f32 %v1188_v43, 0.0 }
 0x24b   :  { %v1251_v44 = vpack.c.bf16 %v1238_v46, %v1237_v63 }
 0x24c   :  { %v1250_v49 = vpack.c.bf16 %v1236_v48, %v1235_v47 }
 0x24e   :  { %1679 = vmatpush3.bf16.xpose.msra.mxu0 %v1250_v49 }
 0x24f   :  { %1680 = vmatprep.subr.bf16.mxu0 %v1951_v21 }
 0x254   :  { %v1668_v52 = vpop.f32.mrb[56].mxu1 }
 0x255   :  { %v1209_v53 = vadd.f32 %v1668_v52, %v1416_v25  ;;  %v1200_v54 = vpop.f32.mrb[57].mxu1 }
 0x256   :  { %v1201_v16 = vadd.f32 %v1416_v25, %v1200_v54  ;;  %v1669_v55 = vpop.f32.mrb[58].mxu1  ;;  %1681 = vmatpush3.bf16.xpose.msra.mxu0 %v1251_v44 }
 0x257   :  { %v1212_v58 = vadd.f32 %v1669_v55, %v1416_v25  ;;  %v1203_v50 = vpop.f32.mrb[59].mxu1  ;;  %1682 = vmatprep.subr.bf16.mxu0 %v1951_v21  ;;  %v1241_v59 = vmax.f32 %v1209_v53, 0.0 }
 0x258   :  { %v1204_v5 = vadd.f32 %v1416_v25, %v1203_v50  ;;  %v1239_v61 = vmax.f32 %v1201_v16, 0.0 }
 0x259   :  { %v1242_v60 = vmax.f32 %v1212_v58, 0.0 }
 0x25a   :  { %v1240_v0 = vmax.f32 %v1204_v5, 0.0 }
 0x25b   :  { %v1253_v22 = vpack.c.bf16 %v1242_v60, %v1241_v59 }
 0x25c   :  { %v1252_v1 = vpack.c.bf16 %v1240_v0, %v1239_v61 }
 0x25e   :  { %1683 = vmatpush3.bf16.xpose.msra.mxu0 %v1252_v1 }
 0x25f   :  { %1684 = vmatprep.subr.bf16.mxu0 %v1951_v21 }
 0x264   :  { %v1672_v2 = vpop.f32.mrb[60].mxu1 }
 0x265   :  { %v1225_v11 = vadd.f32 %v1672_v2, %v1416_v25  ;;  %v1216_v3 = vpop.f32.mrb[61].mxu1 }
 0x266   :  { %v1217_v6 = vadd.f32 %v1416_v25, %v1216_v3  ;;  %v1673_v56 = vpop.f32.mrb[62].mxu1  ;;  %1685 = vmatpush3.bf16.xpose.msra.mxu0 %v1253_v22 }
 0x267   :  { %v1228_v7 = vadd.f32 %v1673_v56, %v1416_v25  ;;  %v1219_v8 = vpop.f32.mrb[63].mxu1  ;;  %1686 = vmatprep.subr.bf16.mxu0 %v1951_v21  ;;  %v1245_v12 = vmax.f32 %v1225_v11, 0.0 }
 0x268   :  { %v1220_v9 = vadd.f32 %v1416_v25, %v1219_v8  ;;  %v1243_v14 = vmax.f32 %v1217_v6, 0.0 }
 0x269   :  { %v1246_v13 = vmax.f32 %v1228_v7, 0.0 }
 0x26a   :  { %v1244_v15 = vmax.f32 %v1220_v9, 0.0 }
 0x26b   :  { %v1255_v45 = vpack.c.bf16 %v1246_v13, %v1245_v12 }
 0x26c   :  { %v1254_v62 = vpack.c.bf16 %v1244_v15, %v1243_v14 }
 0x26e   :  { %1687 = vmatpush3.bf16.xpose.msra.mxu0 %v1254_v62 }
 0x26f   :  { %1688 = vmatprep.subr.bf16.mxu0 %v1951_v21 }
 0x276   :  { %1689 = vmatpush3.bf16.xpose.msra.mxu0 %v1255_v45 }
 0x27d   :  { %1691 = vmatmul.mubr.bf16.vlgmr.msra.gmra.mrb[48].mxu0 %v1247_v17 }
 0x350   :  { %v1296_v19 = vpop.f32.mrb[48].mxu0 }
 0x351   :  { %v1297_v20 = vadd.f32 %v1296_v19, %v1260_v18  ;;  %v1692_v23 = vpop.f32.mrb[49].mxu0 }
 0x352   :  { %v1299_v24 = vpop.f32.mrb[50].mxu0 }
 0x353   :  { %1302 = vst [vmem:[#allocation8] sm:$0xff] %v1297_v20  ;;  %v1693_v25 = vpop.f32.mrb[51].mxu0 }
 0x354   :  { %1927 = shalt.err (!%p1924_p0)
}
 0x355   :  { %s1928_s24 = scalar_lea.hbm %s2131_s7, 128 }
 0x356   :  { %p1929_p1 = scmp.ne.s32.totalorder %s2131_s7, %s1928_s24  ;;  %p1932_p2 = scmp.lt.u32.totalorder %s1928_s24, %s2131_s7 }
 0x358   :  { %p1934_p3 = pnand %p1932_p2, %p1929_p1 }
 0x35a   :  { %1937 = shalt.err (!%p1934_p3)
}
 0x35b   :  { %1312 = dma.vmem_to_hbm [thread:$0]  %s1310_s21, 128, %s2131_s7, [#allocation4]  }
 0x35c   :  { %1942 = dma.done.wait [#allocation4], 128  }
 0x35d   :  { %1943 = vsyncadd [#allocation4], 4294967168 }
 0x35e   :  { %1316 = vsyncpa [#allocation3], 1 }
 0x35f   :  { %1317 = vsyncpa [#allocation6], 1 }
 0x360   :  { %1318 = vsyncpa [#allocation4], 1 }

</bundles_post_ra>
